<compile_context>
chip_gen: v7x
topology: tpu7x:2x2x1
jax: 0.10.0
libtpu: 0.0.40
codegen_flags: <defaults>
</compile_context>

<pallas_src>
import math

import jax
import jax.numpy as jnp
from jax.experimental import pallas as pl
from jax.experimental.pallas import tpu as pltpu

_SQRT_2_OVER_PI = math.sqrt(2.0 / math.pi)
_COEFF = 0.044715


def _gelu_tanh_kernel(x_ref, o_ref):
    # Compute in f32 for accuracy (tanh on EUP), cast back to output dtype.
    xf = x_ref[...].astype(jnp.float32)
    # sqrt(2/pi) * (x + c*x^3) == sqrt(2/pi) * x * (1 + c*x*x)  (fewer muls)
    inner = (_SQRT_2_OVER_PI * xf) * (1.0 + _COEFF * xf * xf)
    y = (0.5 * xf) * (1.0 + jnp.tanh(inner))
    o_ref[...] = y.astype(o_ref.dtype)


def _pick_cols(n, max_cols):
    """Largest power-of-two multiple of 128 (<= max_cols) dividing n, else 0."""
    cols = 0
    c = 128
    while c <= max_cols and n % c == 0:
        cols = c
        c *= 2
    return cols


def gelu_tanh(x, *, max_cols=4096, target_block_bytes=4 * 1024 * 1024):
    """Applies tanh-approx GELU elementwise. x: any shape (NCHW expected)."""
    orig_shape = x.shape
    dtype = x.dtype
    flat = x.reshape(-1)  # contiguous reshape: no data movement
    n = flat.shape[0]

    cols = _pick_cols(n, max_cols)
    pad = 0
    if cols == 0:
        # Rare fallback: element count not a multiple of 128 -> minimal pad.
        cols = 128
        pad = (-n) % cols
        flat = jnp.pad(flat, (0, pad))
    n_padded = n + pad

    rows = n_padded // cols
    x2d = flat.reshape(rows, cols)

    # ~4 MiB blocks, block_rows a multiple of 8; full leading dim if the array
    # is small (always layout-legal).
    itemsize = jnp.dtype(dtype).itemsize
    block_rows = max(target_block_bytes // (cols * itemsize), 8)
    block_rows = (block_rows // 8) * 8
    if block_rows >= rows:
        block_rows = rows  # full leading dim
    grid = (pl.cdiv(rows, block_rows),)  # ragged last block -> masked stores

    out2d = pl.pallas_call(
        _gelu_tanh_kernel,
        out_shape=jax.ShapeDtypeStruct((rows, cols), dtype),
        grid_spec=pltpu.PrefetchScalarGridSpec(
            num_scalar_prefetch=0,
            grid=grid,
            in_specs=[pl.BlockSpec((block_rows, cols), lambda i: (i, 0))],
            out_specs=pl.BlockSpec((block_rows, cols), lambda i: (i, 0)),
        ),
        compiler_params=pltpu.CompilerParams(
            # Shard grid across megacore / v7x's 2 TCs.
            dimension_semantics=("parallel",),
            # Headroom for 4x4 MiB double-buffered pipeline; safe on all chips.
            vmem_limit_bytes=32 * 1024 * 1024,
        ),
    )(x2d)

    out = out2d.reshape(-1)
    if pad:
        out = out[:n]
    return out.reshape(orig_shape)


def gelu_tanh_ref(x):
    xf = x.astype(jnp.float32)
    y = 0.5 * xf * (1.0 + jnp.tanh(_SQRT_2_OVER_PI * (xf + _COEFF * xf ** 3)))
    return y.astype(x.dtype)


if __name__ == "__main__":
    key = jax.random.PRNGKey(0)

    # Primary test: NCHW conv-activation style input (no-pad fast path).
    x = jax.random.normal(key, (2, 4, 16, 16), dtype=jnp.float32)
    out = jax.block_until_ready(gelu_tanh(x))
    ref = gelu_tanh_ref(x)
    assert out.shape == x.shape
    assert out.dtype == x.dtype
    assert jnp.allclose(out, ref, atol=1e-5, rtol=1e-5), "mismatch vs reference"

    # Secondary sanity check: ragged size (not a multiple of 128) fallback.
    x2 = jax.random.normal(key, (3, 5, 7, 11), dtype=jnp.float32)
    out2 = jax.block_until_ready(gelu_tanh(x2))
    ref2 = gelu_tanh_ref(x2)
    assert jnp.allclose(out2, ref2, atol=1e-5, rtol=1e-5), "mismatch (ragged)"

    # bf16 path (common activation dtype) — cast-to-f32 compute, bf16 store.
    x3 = jax.random.normal(key, (2, 4, 16, 16), dtype=jnp.bfloat16)
    out3 = jax.block_until_ready(gelu_tanh(x3))
    ref3 = gelu_tanh_ref(x3)
    assert out3.dtype == jnp.bfloat16
    assert jnp.allclose(out3.astype(jnp.float32), ref3.astype(jnp.float32),
                        atol=2e-2, rtol=2e-2), "mismatch (bf16)"

    print("KERNEL_OK")
</pallas_src>

<mosaic_0001>
module attributes {stable_mosaic.version = 11 : i64} {
  func.func @_gelu_tanh_kernel(%arg0: i32, %arg1: memref<1x2048xf32, #tpu.memory_space<vmem>>, %arg2: memref<1x2048xf32, #tpu.memory_space<vmem>>) attributes {dimension_semantics = [#tpu.dimension_semantics<parallel>], iteration_bounds = array<i64: 1>, scalar_prefetch = 0 : i64, scratch_operands = 0 : i64, tpu.core_type = #tpu.core_type<tc>, window_params = [{transform_indices = @transform_0, window_bounds = array<i64: 1, 2048>}, {transform_indices = @transform_1, window_bounds = array<i64: 1, 2048>}]} {
    %c0 = arith.constant 0 : index
    %c0_0 = arith.constant 0 : index
    %0 = vector.load %arg1[%c0, %c0_0] : memref<1x2048xf32, #tpu.memory_space<vmem>>, vector<1x2048xf32>
    %cst = arith.constant 0.797884583 : f32
    %1 = vector.broadcast %cst : f32 to vector<1x2048xf32>
    %2 = arith.mulf %1, %0 : vector<1x2048xf32>
    %cst_1 = arith.constant 4.471500e-02 : f32
    %3 = vector.broadcast %cst_1 : f32 to vector<1x2048xf32>
    %4 = arith.mulf %3, %0 : vector<1x2048xf32>
    %5 = arith.mulf %4, %0 : vector<1x2048xf32>
    %cst_2 = arith.constant 1.000000e+00 : f32
    %6 = vector.broadcast %cst_2 : f32 to vector<1x2048xf32>
    %7 = arith.addf %6, %5 : vector<1x2048xf32>
    %8 = arith.mulf %2, %7 : vector<1x2048xf32>
    %cst_3 = arith.constant 5.000000e-01 : f32
    %9 = vector.broadcast %cst_3 : f32 to vector<1x2048xf32>
    %10 = arith.mulf %9, %0 : vector<1x2048xf32>
    %11 = math.tanh %8 : vector<1x2048xf32>
    %cst_4 = arith.constant 1.000000e+00 : f32
    %12 = vector.broadcast %cst_4 : f32 to vector<1x2048xf32>
    %13 = arith.addf %12, %11 : vector<1x2048xf32>
    %14 = arith.mulf %10, %13 : vector<1x2048xf32>
    %c0_5 = arith.constant 0 : index
    %c0_6 = arith.constant 0 : index
    %15 = vector.load %arg2[%c0_5, %c0_6] : memref<1x2048xf32, #tpu.memory_space<vmem>>, vector<1x2048xf32>
    tpu.vector_store %arg2[%c0_5, %c0_6], %14 {strides = array<i32>} : memref<1x2048xf32, #tpu.memory_space<vmem>>, vector<1x2048xf32>,
    return
  }
  func.func @transform_0(%arg0: i32) -> (i32, i32) {
    %c0_i32 = arith.constant 0 : i32
    %c0_i32_0 = arith.constant 0 : i32
    return %arg0, %c0_i32 : i32, i32
  }
  func.func @transform_1(%arg0: i32) -> (i32, i32) {
    %c0_i32 = arith.constant 0 : i32
    %c0_i32_0 = arith.constant 0 : i32
    return %arg0, %c0_i32 : i32, i32
  }
}

</mosaic_0001>

<bundles_post_ra>
// kernel: tpu_custom_call.1
= control target key start
LH: loop header
LB: loop body
LE: loop exit
PB: predicated region body
PF: predicated region fallthrough
CT: control target
= control target key end

     0   :  { %6 = vsyncpa [#allocation3], 0  ;;  %s148_s0 = inlined_call_operand.hbm [shape: f32[1,2048], index: 0, kind: input, shape index: {}]   ;;  %s149_s1 = inlined_call_operand.hbm [shape: f32[1,2048], index: 1, kind: output, shape index: {}]  }
   0x1   :  { %7 = vsyncpa [#allocation4], 0  ;;  %s112_s6 = smov [#allocation2]   ;;  %s64_s10 = scalar_lea.hbm %s148_s0, 256 }
   0x2   :  { %s14_s7 = sshll.u32 %s112_s6, 4  ;;  %p65_p0 = scmp.ne.s32.totalorder %s148_s0, %s64_s10  ;;  %s15_s7 = int_to_ptr.vmem [resolvable:$true] %s14_s7 }
   0x3   :  { %p68_p1 = scmp.lt.u32.totalorder %s64_s10, %s148_s0 }
   0x5   :  { %p70_p2 = pnand %p68_p1, %p65_p0 }
   0x7   :  { %73 = shalt.err (!%p70_p2)
}
   0x8   :  { %s74_s15 = scalar_lea.vmem %s15_s7, 256  ;;  %p79_p4 = scmp.lt.s32.totalorder %s15_s7, %s15_s7 }
   0x9   :  { %p75_p3 = scmp.ne.s32.totalorder %s15_s7, %s74_s15  ;;  %p80_p5 = scmp.lt.s32.totalorder %s74_s15, %s74_s15 }
   0xb   :  { %p81_p6 = por %p80_p5, %p79_p4 }
   0xd   :  { %p82_p7 = pnand %p81_p6, %p75_p3 }
   0xf   :  { %85 = shalt.err (!%p82_p7)
}
  0x10   :  { %17 = dma.hbm_to_vmem [thread:$0]  %s148_s0, 256, %s15_s7, [#allocation3]  }
  0x11   :  { %108 = dma.done.wait [#allocation3], 256  }
  0x12   :  { %109 = vsyncadd [#allocation3], 4294967040  ;;  %v21_v0 = vld [vmem:[#allocation2] sm:$0xff]  ;;  %v22_v1 = vld [vmem:[#allocation2 + $0x8] sm:$0xff]  ;;  %s113_s0 = smov [#allocation5]  }
  0x13   :  { %v25_v2 = vmul.f32 0.044715, %v21_v0  ;;  %v26_v3 = vmul.f32 0.044715, %v22_v1  ;;  %v23_v4 = vmul.f32 0.7978846, %v21_v0 }
  0x14   :  { %v24_v6 = vmul.f32 0.7978846, %v22_v1  ;;  %v33_v12 = vmul.f32 0.5, %v21_v0  ;;  %v34_v14 = vmul.f32 0.5, %v22_v1  ;;  %s49_s18 = sshll.u32 %s113_s0, 4  ;;  %s50_s18 = int_to_ptr.vmem [resolvable:$true] %s49_s18 }
  0x15   :  { %v27_v5 = vmul.f32 %v25_v2, %v21_v0  ;;  %v28_v7 = vmul.f32 %v26_v3, %v22_v1  ;;  %s86_s19 = scalar_lea.vmem %s50_s18, 256  ;;  %p91_p9 = scmp.lt.s32.totalorder %s50_s18, %s50_s18 }
  0x16   :  { %p87_p8 = scmp.ne.s32.totalorder %s50_s18, %s86_s19  ;;  %p92_p10 = scmp.lt.s32.totalorder %s86_s19, %s86_s19 }
  0x17   :  { %v29_v8 = vadd.f32 1.0, %v27_v5  ;;  %v30_v9 = vadd.f32 1.0, %v28_v7 }
  0x18   :  { %p93_p11 = por %p92_p10, %p91_p9 }
  0x19   :  { %v31_v10 = vmul.f32 %v29_v8, %v23_v4  ;;  %v32_v11 = vmul.f32 %v30_v9, %v24_v6 }
  0x1a   :  { %p94_p12 = pnand %p93_p11, %p87_p8 }
  0x1b   :  { %60 = vtanh.f32 %v31_v10 }
  0x1c   :  { %62 = vtanh.f32 %v32_v11 }
  0x25   :  { %v61_v13 = vpop.eup %60 }
  0x26   :  { %v63_v15 = vpop.eup %62  ;;  %v37_v16 = vadd.f32 1.0, %v61_v13 }
  0x27   :  { %v38_v17 = vadd.f32 1.0, %v63_v15 }
  0x28   :  { %v39_v18 = vmul.f32 %v37_v16, %v33_v12 }
  0x29   :  { %v40_v19 = vmul.f32 %v38_v17, %v34_v14 }
  0x2a   :  { %41 = vst [vmem:[#allocation5] sm:$0xff] %v39_v18 }
  0x2b   :  { %42 = vst [vmem:[#allocation5 + $0x8] sm:$0xff] %v40_v19 }
  0x2c   :  { %97 = shalt.err (!%p94_p12)
}
  0x2d   :  { %s98_s22 = scalar_lea.hbm %s149_s1, 256 }
  0x2e   :  { %p99_p13 = scmp.ne.s32.totalorder %s149_s1, %s98_s22  ;;  %p102_p0 = scmp.lt.u32.totalorder %s98_s22, %s149_s1 }
  0x30   :  { %p104_p1 = pnand %p102_p0, %p99_p13 }
  0x32   :  { %107 = shalt.err (!%p104_p1)
}
  0x33   :  { %52 = dma.vmem_to_hbm [thread:$0]  %s50_s18, 256, %s149_s1, [#allocation4]  }
  0x34   :  { %110 = dma.done.wait [#allocation4], 256  }
  0x35   :  { %111 = vsyncadd [#allocation4], 4294967040 }
  0x36   :  { %56 = vsyncpa [#allocation3], 1 }
  0x37   :  { %57 = vsyncpa [#allocation4], 1 }

</bundles_post_ra>
